<compile_context>
chip_gen: v7x
topology: tpu7x:2x2x1
jax: 0.10.0
libtpu: 0.0.40
codegen_flags: <defaults>
</compile_context>

<pallas_src>
import jax
import jax.numpy as jnp
from jax.experimental import pallas as pl
from jax.experimental.pallas import tpu as pltpu


def _round_up(x, m):
    return (x + m - 1) // m * m


# -----------------------------------------------------------------------------
# Path 1: out_size == 1  (gridded VPU/XLU GEMV, no MXU).
# -----------------------------------------------------------------------------
def _fc_gemv_kernel(x_ref, w_ref, b_ref, o_ref):
    # x_ref: (tb, k) f32 VMEM     (a block of batch rows, natural layout)
    # w_ref: (1, k)  f32 VMEM     (weight column, broadcast over sublanes)
    # b_ref: (1,)    f32 SMEM     (scalar bias)
    # o_ref: (tb, 1) f32 VMEM
    prod = x_ref[...] * w_ref[...]              # VPU
    s = jnp.sum(prod, axis=1, keepdims=True)    # XLU lane reduce -> (tb, 1)
    o_ref[...] = (s + b_ref[0]).astype(o_ref.dtype)


def _fc_gemv_out1(feats, weight, bias):
    m, k = feats.shape
    w = weight.reshape(1, k)
    b = bias.reshape(1).astype(jnp.float32)

    # Batch tile: keep one (tb, k) f32 block around <= 2 MiB, tb a multiple of 8,
    # capped at 512 rows so large batches actually pipeline.
    row_bytes = k * 4
    tb_cap = max(8, ((2 * 1024 * 1024) // max(row_bytes, 1)) // 8 * 8)
    tb_cap = min(tb_cap, 512)
    if m <= tb_cap:
        tb = m                       # single block; full-dim block is always legal
    else:
        tb = tb_cap                  # multiple of 8; last partial block is write-masked
    grid_m = pl.cdiv(m, tb)

    out = pl.pallas_call(
        _fc_gemv_kernel,
        out_shape=jax.ShapeDtypeStruct((m, 1), feats.dtype),
        grid=(grid_m,),
        in_specs=[
            pl.BlockSpec((tb, k), lambda i: (i, 0)),
            pl.BlockSpec((1, k), lambda i: (0, 0)),
            pl.BlockSpec(memory_space=pltpu.MemorySpace.SMEM),
        ],
        out_specs=pl.BlockSpec((tb, 1), lambda i: (i, 0)),
        compiler_params=pltpu.CompilerParams(
            dimension_semantics=("parallel",),
        ),
        cost_estimate=pl.CostEstimate(
            flops=2 * m * k,
            transcendentals=0,
            bytes_accessed=4 * (m * k + k + m + 1),
        ),
    )(feats, w, b)
    return out


# -----------------------------------------------------------------------------
# Path 2: general tiled MXU matmul  (x @ W + b), no wrapper-side pad/slice.
# -----------------------------------------------------------------------------
def _make_tiled_kernel(k_total, tk, needs_k_mask):
    def kernel(x_ref, w_ref, b_ref, o_ref, acc_ref):
        kk = pl.program_id(2)

        @pl.when(kk == 0)
        def _init():
            acc_ref[...] = jnp.zeros_like(acc_ref)

        x = x_ref[...]
        w = w_ref[...]
        if needs_k_mask:
            # Last K block extends past k_total: stale VMEM in the tail would
            # corrupt the accumulator (and may be non-finite), so zero both
            # operands' K tails.  Cheap VPU selects, emitted only when needed.
            limit = k_total - kk * tk
            lane_k = jax.lax.broadcasted_iota(jnp.int32, x.shape, 1)
            x = jnp.where(lane_k < limit, x, 0.0)
            sub_k = jax.lax.broadcasted_iota(jnp.int32, w.shape, 0)
            w = jnp.where(sub_k < limit, w, 0.0)

        acc_ref[...] += jnp.dot(x, w, preferred_element_type=jnp.float32)

        @pl.when(kk == pl.num_programs(2) - 1)
        def _finalize():
            o_ref[...] = (acc_ref[...] + b_ref[...]).astype(o_ref.dtype)

    return kernel


def _fc_tiled(feats, weight, bias, *, tm=512, tn=512, tk=512):
    m, k = feats.shape
    n = weight.shape[1]

    # Shrink tiles for small dims; keep (8, 128) layout alignment.
    tm = min(tm, _round_up(m, 8))
    tn = min(tn, _round_up(n, 128))
    tk = min(tk, _round_up(k, 128))

    # Keep at least one "parallel" grid axis with >= 2 blocks when the problem
    # allows it, so v7x's two TensorCores both get work.
    if pl.cdiv(m, tm) == 1 and pl.cdiv(n, tn) == 1:
        if m > 256:
            tm = 256
        elif n > 256:
            tn = 256

    grid_i, grid_j, grid_k = pl.cdiv(m, tm), pl.cdiv(n, tn), pl.cdiv(k, tk)
    needs_k_mask = (k % tk) != 0

    b = bias.reshape(1, n)

    # Explicit VMEM budget: double-buffered x/w/bias/out blocks + f32 accumulator.
    vmem_bytes = 4 * (2 * (tm * tk + tk * tn + tn + tm * tn) + tm * tn)
    vmem_limit = min(max(int(vmem_bytes * 1.5), 8 * 1024 * 1024), 48 * 1024 * 1024)

    out = pl.pallas_call(
        _make_tiled_kernel(k, tk, needs_k_mask),
        out_shape=jax.ShapeDtypeStruct((m, n), feats.dtype),
        grid_spec=pltpu.PrefetchScalarGridSpec(
            num_scalar_prefetch=0,
            grid=(grid_i, grid_j, grid_k),
            in_specs=[
                pl.BlockSpec((tm, tk), lambda i, j, kk: (i, kk)),
                pl.BlockSpec((tk, tn), lambda i, j, kk: (kk, j)),
                pl.BlockSpec((1, tn), lambda i, j, kk: (0, j)),
            ],
            out_specs=pl.BlockSpec((tm, tn), lambda i, j, kk: (i, j)),
            scratch_shapes=[pltpu.VMEM((tm, tn), jnp.float32)],
        ),
        compiler_params=pltpu.CompilerParams(
            dimension_semantics=("parallel", "parallel", "arbitrary"),
            vmem_limit_bytes=vmem_limit,
        ),
        cost_estimate=pl.CostEstimate(
            flops=2 * m * k * n,
            transcendentals=0,
            # Actual streamed bytes: x is re-fetched once per j tile, w once per i tile.
            bytes_accessed=4 * (m * k * grid_j + k * n * grid_i + m * n + n),
        ),
    )(feats, weight, b)
    return out


def fc_layer_forward(feats, weight, bias):
    """Pallas implementation of FCLayer.forward: returns (feats, feats @ W + b).

    feats:  (batch, in_size) f32
    weight: (in_size, out_size) f32   (transposed vs torch's (out, in))
    bias:   (out_size,) f32
    """
    m, k = feats.shape
    n = weight.shape[1]
    # GEMV path handles *any* batch size for out_size == 1 as long as a
    # (>=8, in_size) f32 block fits comfortably in VMEM.
    if n == 1 and k <= (1 << 18):
        x = _fc_gemv_out1(feats, weight, bias)
    else:
        x = _fc_tiled(feats, weight, bias)
    return feats, x


if __name__ == "__main__":
    key = jax.random.PRNGKey(0)
    k_x, k_w, k_b = jax.random.split(key, 3)

    # Shapes implied by the module defaults: batch=8, in_size=32, out_size=1.
    batch, in_size, out_size = 8, 32, 1
    feats = jax.random.normal(k_x, (batch, in_size), dtype=jnp.float32)

    # Mimic torch.nn.Linear default init: uniform(-1/sqrt(in), 1/sqrt(in)).
    bound = 1.0 / jnp.sqrt(jnp.float32(in_size))
    weight = jax.random.uniform(
        k_w, (in_size, out_size), dtype=jnp.float32, minval=-bound, maxval=bound
    )
    bias = jax.random.uniform(
        k_b, (out_size,), dtype=jnp.float32, minval=-bound, maxval=bound
    )

    feats_out, x_out = fc_layer_forward(feats, weight, bias)
    jax.block_until_ready((feats_out, x_out))

    x_ref = jnp.dot(feats, weight, precision=jax.lax.Precision.HIGHEST) + bias[None, :]
    assert feats_out.shape == (batch, in_size)
    assert x_out.shape == (batch, out_size)
    assert jnp.allclose(x_out, x_ref, atol=1e-5, rtol=1e-5)
    assert jnp.array_equal(feats_out, feats)

    # Gridded GEMV path: multi-block batch with a partial last block.
    m3, k3 = 1000, 256
    k_x3, k_w3, k_b3 = jax.random.split(jax.random.PRNGKey(2), 3)
    feats3 = jax.random.normal(k_x3, (m3, k3), dtype=jnp.float32)
    weight3 = jax.random.normal(k_w3, (k3, 1), dtype=jnp.float32) * 0.1
    bias3 = jax.random.normal(k_b3, (1,), dtype=jnp.float32)
    _, x3 = fc_layer_forward(feats3, weight3, bias3)
    jax.block_until_ready(x3)
    x3_ref = (
        jnp.dot(feats3, weight3, precision=jax.lax.Precision.HIGHEST) + bias3[None, :]
    )
    assert x3.shape == (m3, 1)
    assert jnp.allclose(x3, x3_ref, atol=1e-4, rtol=1e-4)

    # Tiled MXU path: non-unit out_size, non-tile-aligned M/N and a K tail
    # (exercises the in-kernel K mask and masked M/N output writes).
    m2, k2, n2 = 200, 300, 96
    k_x2, k_w2, k_b2 = jax.random.split(jax.random.PRNGKey(1), 3)
    feats2 = jax.random.normal(k_x2, (m2, k2), dtype=jnp.float32)
    weight2 = jax.random.normal(k_w2, (k2, n2), dtype=jnp.float32) * 0.05
    bias2 = jax.random.normal(k_b2, (n2,), dtype=jnp.float32)
    _, x2 = fc_layer_forward(feats2, weight2, bias2)
    jax.block_until_ready(x2)
    x2_ref = (
        jnp.dot(feats2, weight2, precision=jax.lax.Precision.HIGHEST) + bias2[None, :]
    )
    assert x2.shape == (m2, n2)
    # MXU default precision on f32 inputs is bf16 multi-pass -> loose tolerance.
    assert jnp.allclose(x2, x2_ref, atol=2e-2, rtol=2e-2)

    print("KERNEL_OK")
</pallas_src>

<mosaic_0001>
module attributes {stable_mosaic.version = 11 : i64} {
  func.func @_fc_gemv_kernel(%arg0: i32, %arg1: memref<8x32xf32, #tpu.memory_space<vmem>>, %arg2: memref<1x32xf32, #tpu.memory_space<vmem>>, %arg3: memref<1xf32, #tpu.memory_space<smem>>, %arg4: memref<8x1xf32, #tpu.memory_space<vmem>>) attributes {dimension_semantics = [#tpu.dimension_semantics<parallel>], iteration_bounds = array<i64: 1>, scalar_prefetch = 0 : i64, scratch_operands = 0 : i64, tpu.core_type = #tpu.core_type<tc>, window_params = [{transform_indices = @transform_0, window_bounds = array<i64: 8, 32>}, {pipeline_mode = #tpu.pipeline_mode<synchronous>, transform_indices = @transform_1, window_bounds = array<i64: 1, 32>}, {transform_indices = @transform_2, window_bounds = array<i64: 1>}, {transform_indices = @transform_3, window_bounds = array<i64: 8, 1>}]} {
    %c0 = arith.constant 0 : index
    %c0_0 = arith.constant 0 : index
    %0 = vector.load %arg1[%c0, %c0_0] : memref<8x32xf32, #tpu.memory_space<vmem>>, vector<8x32xf32>
    %c0_1 = arith.constant 0 : index
    %c0_2 = arith.constant 0 : index
    %1 = vector.load %arg2[%c0_1, %c0_2] : memref<1x32xf32, #tpu.memory_space<vmem>>, vector<1x32xf32>
    %2 = vector.broadcast %1 : vector<1x32xf32> to vector<8x32xf32>
    %3 = arith.mulf %0, %2 : vector<8x32xf32>
    %cst = arith.constant dense<0.000000e+00> : vector<8xf32>
    %4 = vector.multi_reduction <add>, %3, %cst [1] : vector<8x32xf32> to vector<8xf32>
    %5 = vector.shape_cast %4 : vector<8xf32> to vector<8x1xf32>
    %c0_3 = arith.constant 0 : index
    %6 = memref.load %arg3[%c0_3] : memref<1xf32, #tpu.memory_space<smem>>
    %7 = vector.broadcast %6 : f32 to vector<8x1xf32>
    %8 = arith.addf %5, %7 : vector<8x1xf32>
    %c0_4 = arith.constant 0 : index
    %c0_5 = arith.constant 0 : index
    %9 = vector.load %arg4[%c0_4, %c0_5] : memref<8x1xf32, #tpu.memory_space<vmem>>, vector<8x1xf32>
    tpu.vector_store %arg4[%c0_4, %c0_5], %8 {strides = array<i32>} : memref<8x1xf32, #tpu.memory_space<vmem>>, vector<8x1xf32>,
    return
  }
  func.func @transform_0(%arg0: i32) -> (i32, i32) {
    %c0_i32 = arith.constant 0 : i32
    %c0_i32_0 = arith.constant 0 : i32
    return %arg0, %c0_i32 : i32, i32
  }
  func.func @transform_1(%arg0: i32) -> (i32, i32) {
    %c0_i32 = arith.constant 0 : i32
    %c0_i32_0 = arith.constant 0 : i32
    %c0_i32_1 = arith.constant 0 : i32
    return %c0_i32, %c0_i32_0 : i32, i32
  }
  func.func @transform_2(%arg0: i32) -> i32 {
    %c0_i32 = arith.constant 0 : i32
    %c0_i32_0 = arith.constant 0 : i32
    return %c0_i32 : i32
  }
  func.func @transform_3(%arg0: i32) -> (i32, i32) {
    %c0_i32 = arith.constant 0 : i32
    %c0_i32_0 = arith.constant 0 : i32
    return %arg0, %c0_i32 : i32, i32
  }
}

</mosaic_0001>

<bundles_post_ra>
// kernel: tpu_custom_call.1
= control target key start
LH: loop header
LB: loop body
LE: loop exit
PB: predicated region body
PF: predicated region fallthrough
CT: control target
= control target key end

     0   :  { %9 = vsyncpa [#allocation4], 0  ;;  %s76_s12 = smov [#allocation3]   ;;  %s118_s0 = inlined_call_operand.hbm [shape: f32[8,32], index: 0, kind: input, shape index: {}]   ;;  %s119_s1 = inlined_call_operand.vmem [shape: f32[1,32], index: 1, kind: input, shape index: {}]   ;;  %s120_s2 = inlined_call_operand.<no memory space> [shape: f32[1], index: 2, kind: input, shape index: {}]   ;;  %s121_s3 = inlined_call_operand.vmem [shape: f32[8,1], index: 3, kind: output, shape index: {}]  }
   0x1   :  { %s16_s13 = sshll.u32 %s76_s12, 4  ;;  %s52_s16 = scalar_lea.hbm %s118_s0, 128  ;;  %s17_s13 = int_to_ptr.vmem [resolvable:$true] %s16_s13 }
   0x2   :  { %p53_p0 = scmp.ne.s32.totalorder %s118_s0, %s52_s16  ;;  %p56_p1 = scmp.lt.u32.totalorder %s52_s16, %s118_s0 }
   0x4   :  { %p58_p2 = pnand %p56_p1, %p53_p0 }
   0x6   :  { %61 = shalt.err (!%p58_p2)
}
   0x7   :  { %s62_s21 = scalar_lea.vmem %s17_s13, 128  ;;  %p67_p4 = scmp.lt.s32.totalorder %s17_s13, %s17_s13 }
   0x8   :  { %p63_p3 = scmp.ne.s32.totalorder %s17_s13, %s62_s21  ;;  %p68_p5 = scmp.lt.s32.totalorder %s62_s21, %s62_s21 }
   0xa   :  { %p69_p6 = por %p68_p5, %p67_p4 }
   0xc   :  { %p70_p7 = pnand %p69_p6, %p63_p3 }
   0xe   :  { %73 = shalt.err (!%p70_p7)
}
   0xf   :  { %19 = dma.hbm_to_vmem [thread:$0]  %s118_s0, 128, %s17_s13, [#allocation4]  }
  0x10   :  { %74 = dma.done.wait [#allocation4], 128  }
  0x11   :  { %75 = vsyncadd [#allocation4], 4294967168  ;;  %v27_v0 = vld [vmem:[#allocation3] sm:$0xff]  ;;  %vm36_vm0 = vcmask 261120   ;;  %v41_v4 = vstv %s120_s2  ;;  %vm43_vm1 = vcmask 7168  }
  0x12   :  { %v50_v1 = vld [vmem:[%s119_s1] ss:$0 sm:$0xff] }
  0x13   :  { %v35_v2 = vmul.f32 %v50_v1, %v27_v0 }
  0x15   :  { %v37_v3 = vsel %vm36_vm0, %v35_v2, 0.0 }
  0x16   :  { %38 = vadd.xlane.f32.xlu0 %v37_v3 }
  0xa3   :  { %v39_v5 = vpop.xlane.xlu0 %38 }
  0xa4   :  { %v42_v6 = vadd.f32 %v41_v4, %v39_v5 }
  0xa6   :  { %44 = vst.msk [vmem:[%s121_s3] sm:$0xff] %vm43_vm1, %v42_v6 }
  0xa7   :  { %49 = vsyncpa [#allocation4], 1 }

</bundles_post_ra>
